<compile_context>
chip_gen: v5e
topology: v5e:2x2
jax: 0.10.0
libtpu: 0.0.40
codegen_flags: <defaults>
</compile_context>

<pallas_src>
import functools

import jax
import jax.numpy as jnp
from jax.experimental import pallas as pl
from jax.experimental.pallas import tpu as pltpu


# ----------------------------------------------------------------------------
# Kernels (each grid step: full batch x one embed tile)
# ----------------------------------------------------------------------------
def _linear_bias_kernel(x_ref, w_ref, b_ref, o_ref):
    # x_ref: [B, F] (bf16), w_ref: [F, Et] (bf16), b_ref: [1, Et] (f32)
    acc = jnp.dot(x_ref[...], w_ref[...], preferred_element_type=jnp.float32)
    o_ref[...] = (acc + b_ref[...]).astype(o_ref.dtype)


def _linear_bn_kernel(x_ref, w_ref, g_ref, beta_ref, o_ref):
    # Fused Linear + training-mode BatchNorm1d epilogue.
    # The Linear bias is omitted: subtracting the per-feature batch mean
    # cancels it exactly. eps = 1e-5 (PyTorch default), biased variance.
    acc = jnp.dot(x_ref[...], w_ref[...], preferred_element_type=jnp.float32)
    n = acc.shape[0]
    mean = jnp.sum(acc, axis=0, keepdims=True) * (1.0 / n)
    diff = acc - mean
    var = jnp.sum(diff * diff, axis=0, keepdims=True) * (1.0 / n)
    inv = jax.lax.rsqrt(var + 1e-5)
    o_ref[...] = (diff * inv * g_ref[...] + beta_ref[...]).astype(o_ref.dtype)


# ----------------------------------------------------------------------------
# Tiling helpers
# ----------------------------------------------------------------------------
def _round_up(v, m):
    return (v + m - 1) // m * m


def _choose_tile_e(feat, embed_p, w_itemsize, *, budget_bytes=8 * 1024 * 1024):
    """Largest multiple-of-128 divisor of embed_p whose double-buffered weight
    tile fits `budget_bytes`, preferring grid length >= 2 (v7x dual-TC)."""
    fallback = None
    t = embed_p
    while t >= 128:
        if embed_p % t == 0:
            fits = 2 * feat * t * w_itemsize <= budget_bytes
            multi_step = (embed_p // t) >= 2 or embed_p <= 128
            if fits and multi_step:
                return t
            if fits and fallback is None:
                fallback = t
        t -= 128
    return fallback if fallback is not None else min(128, embed_p)


# ----------------------------------------------------------------------------
# Pallas wrapper: fused Linear (+ optional BN) in ONE pallas_call
# ----------------------------------------------------------------------------
def embedding_pallas(x, w, b, gamma, beta, *, bn=False):
    batch, feat = x.shape
    embed = w.shape[1]
    embed_p = _round_up(embed, 128)

    if embed_p != embed:
        pad = embed_p - embed
        w = jnp.pad(w, ((0, 0), (0, pad)))
        b = jnp.pad(b, (0, pad))
        gamma = jnp.pad(gamma, (0, pad))
        beta = jnp.pad(beta, (0, pad))

    # Stream the weight (and x) to the MXU in bf16; accumulate in f32.
    xc = x.astype(jnp.bfloat16)
    wc = w.astype(jnp.bfloat16)

    tile_e = _choose_tile_e(feat, embed_p, wc.dtype.itemsize)
    grid = (embed_p // tile_e,)

    # VMEM budget estimate (double-buffered W + out tiles, resident x, vectors).
    est = (2 * feat * tile_e * 2          # W tiles (bf16, double-buffered)
           + batch * feat * 2             # x (resident, constant block index)
           + 2 * batch * tile_e * 4       # output tiles (f32)
           + 2 * 2 * tile_e * 4)          # bias / gamma / beta tiles
    vmem_limit = int(min(64 * 1024 * 1024, max(32 * 1024 * 1024, 2 * est)))

    x_spec = pl.BlockSpec((batch, feat), lambda j: (0, 0))       # full, resident
    w_spec = pl.BlockSpec((feat, tile_e), lambda j: (0, j))      # streamed tiles
    vec_spec = pl.BlockSpec((1, tile_e), lambda j: (0, j))       # per-tile vector
    out_spec = pl.BlockSpec((batch, tile_e), lambda j: (0, j))   # lane-dense

    if bn:
        kernel = _linear_bn_kernel
        operands = (xc, wc,
                    gamma.reshape(1, embed_p).astype(jnp.float32),
                    beta.reshape(1, embed_p).astype(jnp.float32))
        in_specs = [x_spec, w_spec, vec_spec, vec_spec]
    else:
        kernel = _linear_bias_kernel
        operands = (xc, wc, b.reshape(1, embed_p).astype(jnp.float32))
        in_specs = [x_spec, w_spec, vec_spec]

    out = pl.pallas_call(
        kernel,
        out_shape=jax.ShapeDtypeStruct((batch, embed_p), x.dtype),
        grid_spec=pl.GridSpec(
            grid=grid,
            in_specs=in_specs,
            out_specs=out_spec,
        ),
        compiler_params=pltpu.CompilerParams(
            dimension_semantics=("parallel",),
            vmem_limit_bytes=vmem_limit,
        ),
    )(*operands)

    return out[:, :embed] if embed_p != embed else out


# ----------------------------------------------------------------------------
# Embedding module (functional)
# ----------------------------------------------------------------------------
def init_embedding_params(key, feature_dim, embed_dim=256):
    """Matches init_weights (xavier_normal_ Linear weight, zero bias) and
    PyTorch BatchNorm1d defaults (weight=1, bias=0; init_weights is only
    applied to the bottleneck Linear). Weight stored as [feat, embed] (bf16)."""
    std = (2.0 / (feature_dim + embed_dim)) ** 0.5
    w = (jax.random.normal(key, (feature_dim, embed_dim), dtype=jnp.float32)
         * std).astype(jnp.bfloat16)
    b = jnp.zeros((embed_dim,), dtype=jnp.float32)
    gamma = jnp.ones((embed_dim,), dtype=jnp.float32)
    beta = jnp.zeros((embed_dim,), dtype=jnp.float32)
    return {"w": w, "b": b, "gamma": gamma, "beta": beta}


@functools.partial(jax.jit, static_argnames=("emb_type",))
def embedding_forward(params, x, emb_type="ori"):
    # NOTE: self.relu / self.dropout are never used in forward -> not applied.
    # TODO(synk): BN running_mean/var tracking (training side-effect) is not
    # emulated; output values are unaffected.
    return embedding_pallas(x, params["w"], params["b"], params["gamma"],
                            params["beta"], bn=(emb_type == "bn"))


# ----------------------------------------------------------------------------
# Pure-JAX reference (same bf16 weight / f32 accumulation) for sanity check
# ----------------------------------------------------------------------------
def embedding_ref(params, x, emb_type="ori"):
    xb = x.astype(params["w"].dtype)
    y = jnp.dot(xb, params["w"], preferred_element_type=jnp.float32)
    if emb_type == "bn":
        # Bias cancels under batch-mean subtraction, so it is omitted here too.
        mean = jnp.mean(y, axis=0, keepdims=True)
        var = jnp.mean((y - mean) ** 2, axis=0, keepdims=True)
        y = (y - mean) * jax.lax.rsqrt(var + 1e-5) * params["gamma"] + params["beta"]
    else:
        y = y + params["b"]
    return y.astype(x.dtype)


if __name__ == "__main__":
    key = jax.random.PRNGKey(0)
    k_param, k_x = jax.random.split(key)

    batch, feature_dim, embed_dim = 8, 32, 256
    params = init_embedding_params(k_param, feature_dim, embed_dim)
    x = jax.random.normal(k_x, (batch, feature_dim), dtype=jnp.float32)

    # default type='ori' path
    y = embedding_forward(params, x, emb_type="ori")
    jax.block_until_ready(y)
    y_ref = embedding_ref(params, x, emb_type="ori")
    assert jnp.allclose(y, y_ref, atol=1e-3, rtol=1e-3), "ori mismatch"

    # type='bn' path (fused Linear+BN kernel)
    y_bn = embedding_forward(params, x, emb_type="bn")
    jax.block_until_ready(y_bn)
    y_bn_ref = embedding_ref(params, x, emb_type="bn")
    assert jnp.allclose(y_bn, y_bn_ref, atol=1e-3, rtol=1e-3), "bn mismatch"

    print("KERNEL_OK")
</pallas_src>

<mosaic_0001>
module attributes {stable_mosaic.version = 11 : i64} {
  func.func @_linear_bias_kernel(%arg0: i32, %arg1: memref<8x32xbf16, #tpu.memory_space<vmem>>, %arg2: memref<32x128xbf16, #tpu.memory_space<vmem>>, %arg3: memref<1x128xf32, #tpu.memory_space<vmem>>, %arg4: memref<8x128xf32, #tpu.memory_space<vmem>>) attributes {dimension_semantics = [#tpu.dimension_semantics<parallel>], iteration_bounds = array<i64: 2>, scalar_prefetch = 0 : i64, scratch_operands = 0 : i64, tpu.core_type = #tpu.core_type<tc>, window_params = [{pipeline_mode = #tpu.pipeline_mode<synchronous>, transform_indices = @transform_0, window_bounds = array<i64: 8, 32>}, {transform_indices = @transform_1, window_bounds = array<i64: 32, 128>}, {transform_indices = @transform_2, window_bounds = array<i64: 1, 128>}, {transform_indices = @transform_3, window_bounds = array<i64: 8, 128>}]} {
    %c0 = arith.constant 0 : index
    %c0_0 = arith.constant 0 : index
    %0 = vector.load %arg1[%c0, %c0_0] : memref<8x32xbf16, #tpu.memory_space<vmem>>, vector<8x32xbf16>
    %c0_1 = arith.constant 0 : index
    %c0_2 = arith.constant 0 : index
    %1 = vector.load %arg2[%c0_1, %c0_2] : memref<32x128xbf16, #tpu.memory_space<vmem>>, vector<32x128xbf16>
    %cst = arith.constant dense<0.000000e+00> : vector<8x128xf32>
    %2 = tpu.matmul %0, %1, %cst {dimension_numbers = #tpu.dot_dimension_numbers<[1], [0], [0], [1], [0, 0, 1, 1], [], []>} : vector<8x32xbf16>, vector<32x128xbf16>, vector<8x128xf32> -> vector<8x128xf32>
    %c0_3 = arith.constant 0 : index
    %c0_4 = arith.constant 0 : index
    %3 = vector.load %arg3[%c0_3, %c0_4] : memref<1x128xf32, #tpu.memory_space<vmem>>, vector<1x128xf32>
    %4 = vector.broadcast %3 : vector<1x128xf32> to vector<8x128xf32>
    %5 = arith.addf %2, %4 : vector<8x128xf32>
    %c0_5 = arith.constant 0 : index
    %c0_6 = arith.constant 0 : index
    %6 = vector.load %arg4[%c0_5, %c0_6] : memref<8x128xf32, #tpu.memory_space<vmem>>, vector<8x128xf32>
    tpu.vector_store %arg4[%c0_5, %c0_6], %5 {strides = array<i32>} : memref<8x128xf32, #tpu.memory_space<vmem>>, vector<8x128xf32>,
    return
  }
  func.func @transform_0(%arg0: i32) -> (i32, i32) {
    %c0_i32 = arith.constant 0 : i32
    %c0_i32_0 = arith.constant 0 : i32
    %c0_i32_1 = arith.constant 0 : i32
    return %c0_i32, %c0_i32_0 : i32, i32
  }
  func.func @transform_1(%arg0: i32) -> (i32, i32) {
    %c0_i32 = arith.constant 0 : i32
    %c0_i32_0 = arith.constant 0 : i32
    return %c0_i32, %arg0 : i32, i32
  }
  func.func @transform_2(%arg0: i32) -> (i32, i32) {
    %c0_i32 = arith.constant 0 : i32
    %c0_i32_0 = arith.constant 0 : i32
    return %c0_i32, %arg0 : i32, i32
  }
  func.func @transform_3(%arg0: i32) -> (i32, i32) {
    %c0_i32 = arith.constant 0 : i32
    %c0_i32_0 = arith.constant 0 : i32
    return %c0_i32, %arg0 : i32, i32
  }
}

</mosaic_0001>

<bundles_post_ra>
// kernel: embedding_forward.1
= control target key start
LH: loop header
LB: loop body
LE: loop exit
PB: predicated region body
PF: predicated region fallthrough
CT: control target
= control target key end

     0   :  { %8 = vsyncpa [#allocation3], 0  ;;  %s667_s0 = inlined_call_operand.vmem [shape: bf16[8,32], index: 0, kind: input, shape index: {}]   ;;  %s668_s1 = inlined_call_operand.hbm [shape: bf16[32,256], index: 1, kind: input, shape index: {}]   ;;  %s669_s2 = inlined_call_operand.vmem [shape: f32[1,256], index: 2, kind: input, shape index: {}]   ;;  %s670_s3 = inlined_call_operand.hbm [shape: f32[8,256], index: 3, kind: output, shape index: {}]  }
   0x1   :  { %10 = vsyncpa [#allocation3 + $0x1], 0 }
   0x2   :  { %11 = vsyncpa [#allocation4], 0 }
   0x3   :  { %13 = vsyncpa [#allocation4 + $0x1], 0  ;;  %s533_s12 = smov 0   ;;  %s535_s13 = smov 0  }
   0x4   :  { %s537_s14 = smov 0   ;;  %s539_s15 = smov 0  }
   0x5 LB: > { %s554_s16 = sadd.s32 4294967295, %s508_s15   ;;  %s339_s17 = sadd.s32 4294967294, %s508_s15   ;;  %s508_s15 = sphi %s539_s15, %s679_s15   ;;  %s504_s14 = sphi %s537_s14, %s678_s14   ;;  %s500_s13 = sphi %s535_s13, %s677_s13   ;;  %s496_s12 = sphi %s533_s12, %s676_s12  }
   0x6   : > { %s558_s18 = sadd.s32 1, %s508_s15   ;;  %s47_s19 = sadd.s32 1, %s504_s14 }
   0x7   : > { %s44_s20 = ssub.s32 %s508_s15, %s558_s18  ;;  %p54_p0 = scmp.ne.s32.totalorder %s504_s14, %s500_s13 }
   0x8   : > { %p45_p1 = scmp.eq.s32.totalorder %s44_s20, 0  ;;  %p55_p2 = scmp.eq.s32.totalorder %s508_s15, 0 }
   0x9   : > { %p60_p3 = scmp.ne.s32.totalorder %s500_s13, %s496_s12  ;;  %p61_p4 = scmp.eq.s32.totalorder %s554_s16, 0 }
   0xa   : > { %s570_s21 = scalar_select %p45_p1, %s504_s14, %s47_s19  }
   0xb   : > { %p572_p5 = por %p55_p2, %p54_p0  ;;  %p576_p6 = por %p61_p4, %p60_p3 }
   0xc   : > { %p110_p7 = scmp.eq.s32.totalorder %s554_s16, 1  ;;  %p116_p8 = scmp.eq.s32.totalorder %s339_s17, 1 }
   0xd   : > { %p341_p9 = scmp.ge.s32.totalorder %s508_s15, 2  ;;  %p374_p10 = scmp.lt.s32.totalorder %s508_s15, 2 }
   0xe   : > { %p583_p11 = por %p110_p7, %p54_p0  ;;  %p587_p12 = por %p116_p8, %p60_p3 }
   0xf   : > { %s139_s26 = sand.u32 1, %s504_s14   ;;  %s343_s27 = sshll.u32 %s508_s15, 2 }
  0x10   : > { %s342_s28 = sshll.u32 %s139_s26, 4  ;;  %s147_s4 = scalar_lea.hbm %s668_s1, %s343_s27 }
  0x11   : > { %s148_s5 = sshll.u32 %s147_s4, 4  ;;  %s143_s6 = scalar_lea.vmem [#allocation2], %s342_s28  ;;  %s149_s5 = int_to_ptr.hbm [resolvable:$true] %s148_s5 }
  0x12   : > { %s150_s7 = sshll.u32 %s143_s6, 4  ;;  %p598_p13 = pnand %p374_p10, %p572_p5  ;;  %s151_s7 = int_to_ptr.vmem [resolvable:$true] %s150_s7 }
  0x13   : > { %p344_p0 = scmp.ge.s32.totalorder %s508_s15, 1  ;;  %s140_s9 = scalar_lea.sflag [#allocation3], %s139_s26 }
  0x14   : > { %s412_s10 = sshra.s32 %s149_s5, 4  ;;  %p416_p2 = pneg %p598_p13  ;;  %s413_s10 = int_to_ptr.hbm [resolvable:$true] %s412_s10 }
  0x15   : > { %s414_s11 = scalar_lea.hbm %s413_s10, 16  ;;  %s419_s20 = scalar_lea.hbm %s668_s1, 32 }
  0x16   : > { %p415_p1 = scmp.ne.s32.totalorder %s413_s10, %s414_s11  ;;  %p420_p5 = scmp.lt.s32.totalorder %s413_s10, %s668_s1 }
  0x17   : > { %p421_p7 = scmp.lt.s32.totalorder %s419_s20, %s414_s11 }
  0x18   : > { %p417_p3 = pnand %p416_p2, %p415_p1 }
  0x19   : > { %p422_p8 = por %p421_p7, %p420_p5 }
  0x1a   : > { %p418_p4 = pneg %p417_p3 }
  0x1c   : > { %p423_p10 = pnand %p422_p8, %p418_p4 }
  0x1e   : > { %426 = shalt.err (!%p423_p10)
}
  0x1f   : > { %s510_s26 = smov 128   ;;  %s511_s28 = smov 64  }
  0x20   : > { %s512_s29 = smov 4   ;;  %p164_p1 = scmp.lt.s32.totalorder %s508_s15, 3 }
  0x21   : > { %369 = dma.hbm_to_vmem [thread:$0]  (!%p598_p13), %s149_s5, 256, %s151_s7, %s140_s9, %s510_s26, %s511_s28, %s512_s29  }
  0x22   : > { %p165_p2 = pnand %p344_p0, %p164_p1 }
  0x23   : > { %s617_s30 = sand.u32 (!%p165_p2), 1, %s500_s13  }
  0x24   : > { %168 = sbr.rel (%p165_p2) target bundleno = 184 (0xb8), region = 32  ;;  %s345_s4 = sshll.u32 (!%p165_p2), %s617_s30, 4 }
  0x25   : > { %s171_s6 = scalar_lea.sflag (!%p165_p2), [#allocation3], %s617_s30  ;;  %s174_s10 = scalar_lea.vmem (!%p165_p2), [#allocation2], %s345_s4 }
  0x29   : > { %487 = dma.done.wait (%p576_p6), %s171_s6, 256  }
  0x2a   : > { %489 = vsyncadd (%p576_p6), %s171_s6, 4294967040  ;;  %p201_p13 = scmp.lt.s32.totalorder %s554_s16, 1  ;;  %v361_v0 = vld [vmem:[%s174_s10 + $0x8] sm:$0xff]  ;;  %v360_v1 = vld [vmem:[%s174_s10] sm:$0xff]  ;;  %vm226_vm0 = vcmask 261120   ;;  %s357_s23 = sshll.u32 %s554_s16, 3 }
  0x2b   : > { %236 = vmatpush.bf16.msra.mxu0 %v361_v0  ;;  %v205_v2 = vld [vmem:[%s667_s0] sm:$0xf]  ;;  %s346_s19 = sshll.u32 %s617_s30, 3  ;;  %s255_s27 = scalar_lea.hbm %s670_s3, %s357_s23 }
  0x2c   : > { %s202_s5 = scalar_select %p201_p13, %s554_s16, 1 }
  0x2d   : > { %s200_s26 = scalar_lea.vmem [#allocation5], %s346_s19  ;;  %s259_s29 = sshll.u32 %s255_s27, 4  ;;  %s260_s29 = int_to_ptr.hbm [resolvable:$true] %s259_s29 }
  0x2e   : > { %s203_s9 = scalar_lea.vmem %s669_s2, %s202_s5  ;;  %s257_s28 = sshll.u32 %s200_s26, 4  ;;  %s258_s28 = int_to_ptr.vmem [resolvable:$true] %s257_s28 }
  0x2f   : > { %237 = vmatpush.bf16.msra.mxu0 %v360_v1  ;;  %v411_v3 = vld [vmem:[%s203_s9] ss:$0 sm:$0xff]  ;;  %s245_s4 = scalar_lea.sflag [#allocation4], %s617_s30  ;;  %s456_s6 = sshra.s32 %s260_s29, 4  ;;  %s457_s6 = int_to_ptr.hbm [resolvable:$true] %s456_s6 }
  0x30   : > { %s458_s10 = scalar_lea.hbm %s457_s6, 8  ;;  %s462_s7 = scalar_lea.hbm %s670_s3, 16 }
  0x31   : > { %p459_p6 = scmp.ne.s32.totalorder %s457_s6, %s458_s10  ;;  %p463_p4 = scmp.lt.s32.totalorder %s457_s6, %s670_s3 }
  0x32   : > { %355 = vmatmul.msk.bf16.vlgmr.msra.gmra.mxu0 %vm226_vm0, %v205_v2  ;;  %p464_p5 = scmp.lt.s32.totalorder %s462_s7, %s458_s10 }
  0x33   : > { %p460_p0 = pnand %p459_p6, %p583_p11 }
  0x34   : > { %p465_p7 = por %p464_p5, %p463_p4 }
  0x35   : > { %p461_p3 = pneg %p460_p0 }
  0x37   : > { %p466_p8 = pnand %p465_p7, %p461_p3 }
  0xaf   : > { %v239_v4 = vpop.f32.mrf.mxu0 }
  0xb0   : > { %v240_v5 = vadd.f32 %v411_v3, %v239_v4 }
  0xb2   : > { %243 = vst [vmem:[%s200_s26] sm:$0xff] %v240_v5 }
  0xb3   : > { %469 = shalt.err (!%p466_p8)
}
  0xb4   : > { %364 = dma.vmem_to_hbm [thread:$0]  (%p583_p11), %s258_s28, 128, %s260_s29, %s245_s4  }
  0xb7   : > { %v241_v6 = vpop.f32.mrf.mxu0 }
  0xb8 PF: > { %s271_s30 = sand.u32 1, %s496_s12   ;;  %p371_p10 = pnand %p341_p9, %p587_p12 }
  0xb9   : > { %s272_s11 = scalar_lea.sflag [#allocation4], %s271_s30 }
  0xba   : > { %p372_p1 = pneg %p371_p10 }
  0xbc   : > { %491 = dma.done.wait (%p372_p1), %s272_s11, 128  }
  0xbd   : > { %493 = vsyncadd (%p372_p1), %s272_s11, 4294967168  ;;  %p16_p2 = scmp.ge.s32.totalorder %s558_s18, 4   ;;  %s676_s12 = smov %s500_s13 }
  0xbe   : > { %s677_s13 = smov %s504_s14  ;;  %s678_s14 = smov %s570_s21 }
  0xbf   : > { %s679_s15 = smov %s558_s18  ;;  %18 = sbr.rel (!%p16_p2) target bundleno = 5 (0x5), region = 80 }
  0xc4   :  { %278 = vsyncpa [#allocation3], 1 }
  0xc5   :  { %280 = vsyncpa [#allocation3 + $0x1], 1 }
  0xc6   :  { %281 = vsyncpa [#allocation4], 1 }
  0xc7   :  { %283 = vsyncpa [#allocation4 + $0x1], 1 }

</bundles_post_ra>
